<compile_context>
chip_gen: v5e
topology: v5e:2x2
jax: 0.10.0
libtpu: 0.0.40
codegen_flags: <defaults>
</compile_context>

<pallas_src>
import functools

import jax
import jax.numpy as jnp
from jax.experimental import pallas as pl
from jax.experimental.pallas import tpu as pltpu


NUM_FEATURES = 784
NUM_CLASSES = 10
NUM_CLASSES_PAD = 128  # lane-dense output slab


def _round_up(x, m):
    return ((x + m - 1) // m) * m


def _mlp_softmax_kernel(x_ref, w1_ref, b1_ref, w2_ref, b2_ref, w3_ref, b3_ref, out_ref):
    # Layer 1: Linear + ReLU  (bf16 MXU matmul, f32 accumulation)
    x = x_ref[...]                                                         # (TB, 784) bf16
    h1 = jnp.dot(x, w1_ref[...], preferred_element_type=jnp.float32) + b1_ref[...]
    h1 = jnp.maximum(h1, 0.0).astype(jnp.bfloat16)

    # Layer 2: Linear + ReLU
    h2 = jnp.dot(h1, w2_ref[...], preferred_element_type=jnp.float32) + b2_ref[...]
    h2 = jnp.maximum(h2, 0.0).astype(jnp.bfloat16)

    # Output layer: Linear into the 128-wide padded class slab.
    # Padded classes have zero weights and bias = -1e30 -> exp() == 0 below.
    logits = jnp.dot(h2, w3_ref[...], preferred_element_type=jnp.float32) + b3_ref[...]

    # Numerically stable softmax over the class axis (padded lanes vanish).
    m = jnp.max(logits, axis=1, keepdims=True)
    e = jnp.exp(logits - m)
    s = jnp.sum(e, axis=1, keepdims=True)
    out_ref[...] = (e * pl.reciprocal(s, approx=True)).astype(out_ref.dtype)


@functools.partial(jax.jit, static_argnames=("tb_max",))
def multiclass_forward(x, params, *, tb_max=1024):
    """Fused MLP + softmax Pallas kernel.

    x: (B, 784) float32
    params: dict with w1 (784,L1), b1 (1,L1), w2 (L1,L2), b2 (1,L2), w3 (L2,10), b3 (1,10)
            (weights stored (in, out), i.e. transposed vs. PyTorch, so y = x @ W + b)
    Returns (B, 10) float32 softmax probabilities.
    """
    w1, b1 = params["w1"], params["b1"]
    w2, b2 = params["w2"], params["b2"]
    w3, b3 = params["w3"], params["b3"]

    B, F = x.shape
    L1 = w1.shape[1]
    L2 = w2.shape[1]
    NC = w3.shape[1]

    # bf16 operands for the MXU; biases stay f32 (added to the f32 accumulator).
    x_bf = x.astype(jnp.bfloat16)
    w1_bf = w1.astype(jnp.bfloat16)
    w2_bf = w2.astype(jnp.bfloat16)
    w3_bf = w3.astype(jnp.bfloat16)
    b1_f = b1.astype(jnp.float32)
    b2_f = b2.astype(jnp.float32)
    b3_f = b3.astype(jnp.float32)

    # Pad class dim to a lane-dense 128: zero weights, -1e30 bias for pad classes.
    w3_pad = jnp.zeros((L2, NUM_CLASSES_PAD), jnp.bfloat16).at[:, :NC].set(w3_bf)
    b3_pad = jnp.full((1, NUM_CLASSES_PAD), -1e30, jnp.float32).at[:, :NC].set(b3_f)

    # Batch tile: sublane-aligned for tiny batches (no wasted MXU work / HBM writes),
    # 256..tb_max-row tiles for large batches (tb_max=1024 keeps the working set
    # ~4 MiB with double-buffering -> comfortable even on v7x's 64 MiB VMEM).
    if B <= 256:
        TB = _round_up(B, 8)
    else:
        TB = min(tb_max, _round_up(B, 256))
    B_pad = _round_up(B, TB)
    if B_pad != B:
        x_bf = jnp.pad(x_bf, ((0, B_pad - B), (0, 0)))
    n_steps = B_pad // TB

    cost = pl.CostEstimate(
        flops=2 * B_pad * (F * L1 + L1 * L2 + L2 * NUM_CLASSES_PAD),
        transcendentals=B_pad * NUM_CLASSES_PAD,
        bytes_accessed=(
            B_pad * F * 2                                       # x (bf16)
            + (F * L1 + L1 * L2 + L2 * NUM_CLASSES_PAD) * 2     # weights (bf16)
            + B_pad * NUM_CLASSES_PAD * 4                       # output (f32)
        ),
    )

    out_pad = pl.pallas_call(
        _mlp_softmax_kernel,
        out_shape=jax.ShapeDtypeStruct((B_pad, NUM_CLASSES_PAD), jnp.float32),
        grid=(n_steps,),
        in_specs=[
            pl.BlockSpec((TB, F), lambda i: (i, 0)),                  # x: tiled over batch
            pl.BlockSpec((F, L1), lambda i: (0, 0)),                  # weights/biases: resident
            pl.BlockSpec((1, L1), lambda i: (0, 0)),
            pl.BlockSpec((L1, L2), lambda i: (0, 0)),
            pl.BlockSpec((1, L2), lambda i: (0, 0)),
            pl.BlockSpec((L2, NUM_CLASSES_PAD), lambda i: (0, 0)),
            pl.BlockSpec((1, NUM_CLASSES_PAD), lambda i: (0, 0)),
        ],
        out_specs=pl.BlockSpec((TB, NUM_CLASSES_PAD), lambda i: (i, 0)),
        compiler_params=pltpu.CompilerParams(
            dimension_semantics=("parallel",),
        ),
        cost_estimate=cost,
    )(x_bf, w1_bf, b1_f, w2_bf, b2_f, w3_pad, b3_pad)

    return out_pad[:B, :NC]


def init_params(key, num_features=NUM_FEATURES, num_l1=128, num_l2=64, num_classes=NUM_CLASSES):
    """Deterministic PyTorch-Linear-style init: U(-1/sqrt(fan_in), 1/sqrt(fan_in))."""
    ks = jax.random.split(key, 6)

    def lin(kw, kb, fan_in, fan_out):
        bound = 1.0 / jnp.sqrt(jnp.float32(fan_in))
        # Stored as (in, out) so the kernel computes x @ W.
        w = jax.random.uniform(kw, (fan_in, fan_out), jnp.float32, -bound, bound)
        b = jax.random.uniform(kb, (1, fan_out), jnp.float32, -bound, bound)
        return w, b

    w1, b1 = lin(ks[0], ks[1], num_features, num_l1)
    w2, b2 = lin(ks[2], ks[3], num_l1, num_l2)
    w3, b3 = lin(ks[4], ks[5], num_l2, num_classes)
    return {"w1": w1, "b1": b1, "w2": w2, "b2": b2, "w3": w3, "b3": b3}


def reference_forward(x, p):
    h1 = jnp.maximum(x @ p["w1"] + p["b1"], 0.0)
    h2 = jnp.maximum(h1 @ p["w2"] + p["b2"], 0.0)
    logits = h2 @ p["w3"] + p["b3"]
    return jax.nn.softmax(logits, axis=1)


if __name__ == "__main__":
    key = jax.random.PRNGKey(0)
    k_x, k_p = jax.random.split(key)

    B, NUM_L1, NUM_L2 = 8, 128, 64
    x = jax.random.normal(k_x, (B, NUM_FEATURES), jnp.float32)
    params = init_params(k_p, NUM_FEATURES, NUM_L1, NUM_L2, NUM_CLASSES)

    out = multiclass_forward(x, params)
    out = jax.block_until_ready(out)

    ref = reference_forward(x, params)
    assert out.shape == (B, NUM_CLASSES)
    # bf16 matmuls + approx reciprocal -> relaxed tolerance vs. the f32 reference.
    assert jnp.allclose(out, ref, atol=2e-2, rtol=2e-2), float(jnp.max(jnp.abs(out - ref)))
    # rows of a softmax sum to ~1 (padded classes contribute exp(-1e30) == 0)
    assert jnp.allclose(jnp.sum(out, axis=1), jnp.ones((B,)), atol=1e-2)

    print("KERNEL_OK")
</pallas_src>

<mosaic_0001>
module attributes {stable_mosaic.version = 11 : i64} {
  func.func @_mlp_softmax_kernel(%arg0: i32, %arg1: memref<8x784xbf16, #tpu.memory_space<vmem>>, %arg2: memref<784x128xbf16, #tpu.memory_space<vmem>>, %arg3: memref<1x128xf32, #tpu.memory_space<vmem>>, %arg4: memref<128x64xbf16, #tpu.memory_space<vmem>>, %arg5: memref<1x64xf32, #tpu.memory_space<vmem>>, %arg6: memref<64x128xbf16, #tpu.memory_space<vmem>>, %arg7: memref<1x128xf32, #tpu.memory_space<vmem>>, %arg8: memref<8x128xf32, #tpu.memory_space<vmem>>) attributes {dimension_semantics = [#tpu.dimension_semantics<parallel>], iteration_bounds = array<i64: 1>, scalar_prefetch = 0 : i64, scratch_operands = 0 : i64, tpu.core_type = #tpu.core_type<tc>, window_params = [{transform_indices = @transform_0, window_bounds = array<i64: 8, 784>}, {pipeline_mode = #tpu.pipeline_mode<synchronous>, transform_indices = @transform_1, window_bounds = array<i64: 784, 128>}, {pipeline_mode = #tpu.pipeline_mode<synchronous>, transform_indices = @transform_2, window_bounds = array<i64: 1, 128>}, {pipeline_mode = #tpu.pipeline_mode<synchronous>, transform_indices = @transform_3, window_bounds = array<i64: 128, 64>}, {pipeline_mode = #tpu.pipeline_mode<synchronous>, transform_indices = @transform_4, window_bounds = array<i64: 1, 64>}, {pipeline_mode = #tpu.pipeline_mode<synchronous>, transform_indices = @transform_5, window_bounds = array<i64: 64, 128>}, {pipeline_mode = #tpu.pipeline_mode<synchronous>, transform_indices = @transform_6, window_bounds = array<i64: 1, 128>}, {transform_indices = @transform_7, window_bounds = array<i64: 8, 128>}]} {
    %c0 = arith.constant 0 : index
    %c0_0 = arith.constant 0 : index
    %0 = vector.load %arg1[%c0, %c0_0] : memref<8x784xbf16, #tpu.memory_space<vmem>>, vector<8x784xbf16>
    %c0_1 = arith.constant 0 : index
    %c0_2 = arith.constant 0 : index
    %1 = vector.load %arg2[%c0_1, %c0_2] : memref<784x128xbf16, #tpu.memory_space<vmem>>, vector<784x128xbf16>
    %cst = arith.constant dense<0.000000e+00> : vector<8x128xf32>
    %2 = tpu.matmul %0, %1, %cst {dimension_numbers = #tpu.dot_dimension_numbers<[1], [0], [0], [1], [0, 0, 1, 1], [], []>} : vector<8x784xbf16>, vector<784x128xbf16>, vector<8x128xf32> -> vector<8x128xf32>
    %c0_3 = arith.constant 0 : index
    %c0_4 = arith.constant 0 : index
    %3 = vector.load %arg3[%c0_3, %c0_4] : memref<1x128xf32, #tpu.memory_space<vmem>>, vector<1x128xf32>
    %4 = vector.broadcast %3 : vector<1x128xf32> to vector<8x128xf32>
    %5 = arith.addf %2, %4 : vector<8x128xf32>
    %cst_5 = arith.constant 0.000000e+00 : f32
    %6 = vector.broadcast %cst_5 : f32 to vector<8x128xf32>
    %7 = arith.maximumf %5, %6 : vector<8x128xf32>
    %8 = arith.truncf %7 : vector<8x128xf32> to vector<8x128xbf16>
    %c0_6 = arith.constant 0 : index
    %c0_7 = arith.constant 0 : index
    %9 = vector.load %arg4[%c0_6, %c0_7] : memref<128x64xbf16, #tpu.memory_space<vmem>>, vector<128x64xbf16>
    %cst_8 = arith.constant dense<0.000000e+00> : vector<8x64xf32>
    %10 = tpu.matmul %8, %9, %cst_8 {dimension_numbers = #tpu.dot_dimension_numbers<[1], [0], [0], [1], [0, 0, 1, 1], [], []>} : vector<8x128xbf16>, vector<128x64xbf16>, vector<8x64xf32> -> vector<8x64xf32>
    %c0_9 = arith.constant 0 : index
    %c0_10 = arith.constant 0 : index
    %11 = vector.load %arg5[%c0_9, %c0_10] : memref<1x64xf32, #tpu.memory_space<vmem>>, vector<1x64xf32>
    %12 = vector.broadcast %11 : vector<1x64xf32> to vector<8x64xf32>
    %13 = arith.addf %10, %12 : vector<8x64xf32>
    %cst_11 = arith.constant 0.000000e+00 : f32
    %14 = vector.broadcast %cst_11 : f32 to vector<8x64xf32>
    %15 = arith.maximumf %13, %14 : vector<8x64xf32>
    %16 = arith.truncf %15 : vector<8x64xf32> to vector<8x64xbf16>
    %c0_12 = arith.constant 0 : index
    %c0_13 = arith.constant 0 : index
    %17 = vector.load %arg6[%c0_12, %c0_13] : memref<64x128xbf16, #tpu.memory_space<vmem>>, vector<64x128xbf16>
    %cst_14 = arith.constant dense<0.000000e+00> : vector<8x128xf32>
    %18 = tpu.matmul %16, %17, %cst_14 {dimension_numbers = #tpu.dot_dimension_numbers<[1], [0], [0], [1], [0, 0, 1, 1], [], []>} : vector<8x64xbf16>, vector<64x128xbf16>, vector<8x128xf32> -> vector<8x128xf32>
    %c0_15 = arith.constant 0 : index
    %c0_16 = arith.constant 0 : index
    %19 = vector.load %arg7[%c0_15, %c0_16] : memref<1x128xf32, #tpu.memory_space<vmem>>, vector<1x128xf32>
    %20 = vector.broadcast %19 : vector<1x128xf32> to vector<8x128xf32>
    %21 = arith.addf %18, %20 : vector<8x128xf32>
    %cst_17 = arith.constant dense<0xFF800000> : vector<8xf32>
    %22 = vector.multi_reduction <maximumf>, %21, %cst_17 [1] : vector<8x128xf32> to vector<8xf32>
    %23 = vector.shape_cast %22 : vector<8xf32> to vector<8x1xf32>
    %24 = vector.broadcast %23 : vector<8x1xf32> to vector<8x128xf32>
    %25 = arith.subf %21, %24 : vector<8x128xf32>
    %26 = math.exp %25 : vector<8x128xf32>
    %cst_18 = arith.constant dense<0.000000e+00> : vector<8xf32>
    %27 = vector.multi_reduction <add>, %26, %cst_18 [1] : vector<8x128xf32> to vector<8xf32>
    %28 = vector.shape_cast %27 : vector<8xf32> to vector<8x1xf32>
    %29 = tpu.reciprocal %28 {approx = true} : vector<8x1xf32> -> vector<8x1xf32>
    %30 = vector.broadcast %29 : vector<8x1xf32> to vector<8x128xf32>
    %31 = arith.mulf %26, %30 : vector<8x128xf32>
    %c0_19 = arith.constant 0 : index
    %c0_20 = arith.constant 0 : index
    %32 = vector.load %arg8[%c0_19, %c0_20] : memref<8x128xf32, #tpu.memory_space<vmem>>, vector<8x128xf32>
    tpu.vector_store %arg8[%c0_19, %c0_20], %31 {strides = array<i32>} : memref<8x128xf32, #tpu.memory_space<vmem>>, vector<8x128xf32>,
    return
  }
  func.func @transform_0(%arg0: i32) -> (i32, i32) {
    %c0_i32 = arith.constant 0 : i32
    %c0_i32_0 = arith.constant 0 : i32
    return %arg0, %c0_i32 : i32, i32
  }
  func.func @transform_1(%arg0: i32) -> (i32, i32) {
    %c0_i32 = arith.constant 0 : i32
    %c0_i32_0 = arith.constant 0 : i32
    %c0_i32_1 = arith.constant 0 : i32
    return %c0_i32, %c0_i32_0 : i32, i32
  }
  func.func @transform_2(%arg0: i32) -> (i32, i32) {
    %c0_i32 = arith.constant 0 : i32
    %c0_i32_0 = arith.constant 0 : i32
    %c0_i32_1 = arith.constant 0 : i32
    return %c0_i32, %c0_i32_0 : i32, i32
  }
  func.func @transform_3(%arg0: i32) -> (i32, i32) {
    %c0_i32 = arith.constant 0 : i32
    %c0_i32_0 = arith.constant 0 : i32
    %c0_i32_1 = arith.constant 0 : i32
    return %c0_i32, %c0_i32_0 : i32, i32
  }
  func.func @transform_4(%arg0: i32) -> (i32, i32) {
    %c0_i32 = arith.constant 0 : i32
    %c0_i32_0 = arith.constant 0 : i32
    %c0_i32_1 = arith.constant 0 : i32
    return %c0_i32, %c0_i32_0 : i32, i32
  }
  func.func @transform_5(%arg0: i32) -> (i32, i32) {
    %c0_i32 = arith.constant 0 : i32
    %c0_i32_0 = arith.constant 0 : i32
    %c0_i32_1 = arith.constant 0 : i32
    return %c0_i32, %c0_i32_0 : i32, i32
  }
  func.func @transform_6(%arg0: i32) -> (i32, i32) {
    %c0_i32 = arith.constant 0 : i32
    %c0_i32_0 = arith.constant 0 : i32
    %c0_i32_1 = arith.constant 0 : i32
    return %c0_i32, %c0_i32_0 : i32, i32
  }
  func.func @transform_7(%arg0: i32) -> (i32, i32) {
    %c0_i32 = arith.constant 0 : i32
    %c0_i32_0 = arith.constant 0 : i32
    return %arg0, %c0_i32 : i32, i32
  }
}

</mosaic_0001>

<bundles_post_ra>
// kernel: multiclass_forward.1
= control target key start
LH: loop header
LB: loop body
LE: loop exit
PB: predicated region body
PF: predicated region fallthrough
CT: control target
= control target key end

     0   :  { %s1300_s0 = inlined_call_operand.vmem [shape: bf16[8,784], index: 0, kind: input, shape index: {}]   ;;  %s1301_s1 = inlined_call_operand.vmem [shape: bf16[784,128], index: 1, kind: input, shape index: {}]   ;;  %s1302_s2 = inlined_call_operand.vmem [shape: f32[1,128], index: 2, kind: input, shape index: {}]   ;;  %s1303_s3 = inlined_call_operand.vmem [shape: bf16[128,64], index: 3, kind: input, shape index: {}]   ;;  %s1304_s4 = inlined_call_operand.vmem [shape: f32[1,64], index: 4, kind: input, shape index: {}]   ;;  %s1305_s5 = inlined_call_operand.vmem [shape: bf16[64,128], index: 5, kind: input, shape index: {}]   ;;  %s1306_s6 = inlined_call_operand.vmem [shape: f32[1,128], index: 6, kind: input, shape index: {}]   ;;  %s1307_s7 = inlined_call_operand.hbm [shape: f32[8,128], index: 7, kind: output, shape index: {}]  }
   0x1   :  { %v964_v0 = vld [vmem:[%s1301_s1 + $0x38] sm:$0xff]  ;;  %v963_v3 = vld [vmem:[%s1301_s1 + $0x30] sm:$0xff]  ;;  %v962_v8 = vld [vmem:[%s1301_s1 + $0x28] sm:$0xff] }
   0x2   :  { %v972_v1 = vld [vmem:[%s1301_s1 + $0x78] sm:$0xff]  ;;  %456 = vmatpush.bf16.msra.mxu0 %v964_v0  ;;  %v971_v4 = vld [vmem:[%s1301_s1 + $0x70] sm:$0xff]  ;;  %v970_v9 = vld [vmem:[%s1301_s1 + $0x68] sm:$0xff] }
   0x3   :  { %v980_v2 = vld [vmem:[%s1301_s1 + $0xb8] sm:$0xff]  ;;  %469 = vmatpush.bf16.msra.mxu1 %v972_v1  ;;  %v979_v5 = vld [vmem:[%s1301_s1 + $0xb0] sm:$0xff]  ;;  %v978_v10 = vld [vmem:[%s1301_s1 + $0xa8] sm:$0xff] }
   0x4   :  { %482 = vmatpush.bf16.msra.mxu2 %v980_v2  ;;  %v988_v6 = vld [vmem:[%s1301_s1 + $0xf8] sm:$0xff]  ;;  %v987_v7 = vld [vmem:[%s1301_s1 + $0xf0] sm:$0xff]  ;;  %v986_v11 = vld [vmem:[%s1301_s1 + $0xe8] sm:$0xff] }
   0x5   :  { %495 = vmatpush.bf16.msra.mxu3 %v988_v6  ;;  %v961_v12 = vld [vmem:[%s1301_s1 + $0x20] sm:$0xff]  ;;  %v960_v16 = vld [vmem:[%s1301_s1 + $0x18] sm:$0xff] }
   0x6   :  { %457 = vmatpush.bf16.msra.mxu0 %v963_v3  ;;  %v969_v13 = vld [vmem:[%s1301_s1 + $0x60] sm:$0xff]  ;;  %v968_v17 = vld [vmem:[%s1301_s1 + $0x58] sm:$0xff] }
   0x7   :  { %470 = vmatpush.bf16.msra.mxu1 %v971_v4  ;;  %v977_v14 = vld [vmem:[%s1301_s1 + $0xa0] sm:$0xff]  ;;  %v976_v18 = vld [vmem:[%s1301_s1 + $0x98] sm:$0xff] }
   0x8   :  { %483 = vmatpush.bf16.msra.mxu2 %v979_v5  ;;  %v985_v15 = vld [vmem:[%s1301_s1 + $0xe0] sm:$0xff] }
   0x9   :  { %496 = vmatpush.bf16.msra.mxu3 %v987_v7 }
   0xa   :  { %458 = vmatpush.bf16.msra.mxu0 %v962_v8 }
   0xb   :  { %471 = vmatpush.bf16.msra.mxu1 %v970_v9 }
   0xc   :  { %484 = vmatpush.bf16.msra.mxu2 %v978_v10 }
   0xd   :  { %497 = vmatpush.bf16.msra.mxu3 %v986_v11 }
   0xe   :  { %459 = vmatpush.bf16.msra.mxu0 %v961_v12 }
   0xf   :  { %472 = vmatpush.bf16.msra.mxu1 %v969_v13 }
  0x10   :  { %485 = vmatpush.bf16.msra.mxu2 %v977_v14 }
  0x11   :  { %12 = vsyncpa [#allocation3], 0  ;;  %498 = vmatpush.bf16.msra.mxu3 %v985_v15  ;;  %v984_v19 = vld [vmem:[%s1301_s1 + $0xd8] sm:$0xff]  ;;  %v959_v20 = vld [vmem:[%s1301_s1 + $0x10] sm:$0xff]  ;;  %vm452_vm0 = vcmask 130048   ;;  %vm668_vm1 = vcmask 523264  }
  0x12   :  { %460 = vmatpush.bf16.msra.mxu0 %v960_v16  ;;  %v967_v21 = vld [vmem:[%s1301_s1 + $0x50] sm:$0xff]  ;;  %v958_v24 = vld [vmem:[%s1301_s1 + $0x8] sm:$0xff]  ;;  %v28_v26 = vld [vmem:[%s1300_s0] sm:$0xff]  ;;  %s702_s19 = sshll.u32 %s1307_s7, 4  ;;  %s703_s19 = int_to_ptr.hbm [resolvable:$true] %s702_s19 }
  0x13   :  { %473 = vmatpush.bf16.msra.mxu1 %v968_v17  ;;  %v975_v22 = vld [vmem:[%s1301_s1 + $0x90] sm:$0xff]  ;;  %v966_v25 = vld [vmem:[%s1301_s1 + $0x48] sm:$0xff]  ;;  %v138_v29 = vunpack.c.l.b16 %v28_v26  ;;  %v139_v31 = vunpack.c.h.b16 %v28_v26  ;;  %v957_v32 = vld [vmem:[%s1301_s1] sm:$0xff] }
  0x14   :  { %486 = vmatpush.bf16.msra.mxu2 %v976_v18  ;;  %v983_v23 = vld [vmem:[%s1301_s1 + $0xd0] sm:$0xff]  ;;  %v974_v27 = vld [vmem:[%s1301_s1 + $0x88] sm:$0xff]  ;;  %v965_v33 = vld [vmem:[%s1301_s1 + $0x40] sm:$0xff] }
  0x15   :  { %499 = vmatpush.bf16.msra.mxu3 %v984_v19  ;;  %v29_v28 = vld [vmem:[%s1300_s0 + $0x8] sm:$0xff]  ;;  %v996_v34 = vld [vmem:[%s1301_s1 + $0x138] sm:$0xff]  ;;  %v973_v36 = vld [vmem:[%s1301_s1 + $0x80] sm:$0xff]  ;;  %v145_v38 = vpack.c.b16 %v138_v29, %v138_v29  ;;  %v146_v39 = vpack.c.b16 %v139_v31, %v139_v31 }
  0x16   :  { %461 = vmatpush.bf16.msra.mxu0 %v959_v20  ;;  %v982_v30 = vld [vmem:[%s1301_s1 + $0xc8] sm:$0xff]  ;;  %v1004_v35 = vld [vmem:[%s1301_s1 + $0x178] sm:$0xff]  ;;  %v140_v37 = vunpack.c.l.b16 %v29_v28  ;;  %v141_v40 = vunpack.c.h.b16 %v29_v28  ;;  %v981_v41 = vld [vmem:[%s1301_s1 + $0xc0] sm:$0xff] }
  0x17   :  { %474 = vmatpush.bf16.msra.mxu1 %v967_v21  ;;  %v1005_v42 = vld [vmem:[%s1301_s1 + $0x180] sm:$0xff]  ;;  %v995_v43 = vld [vmem:[%s1301_s1 + $0x130] sm:$0xff]  ;;  %v994_v47 = vld [vmem:[%s1301_s1 + $0x128] sm:$0xff] }
  0x18   :  { %487 = vmatpush.bf16.msra.mxu2 %v975_v22  ;;  %v1003_v44 = vld [vmem:[%s1301_s1 + $0x170] sm:$0xff]  ;;  %v147_v45 = vpack.c.b16 %v140_v37, %v140_v37  ;;  %v148_v46 = vpack.c.b16 %v141_v40, %v141_v40  ;;  %v1002_v48 = vld [vmem:[%s1301_s1 + $0x168] sm:$0xff]  ;;  %v993_v49 = vld [vmem:[%s1301_s1 + $0x120] sm:$0xff] }
  0x19   :  { %500 = vmatpush.bf16.msra.mxu3 %v983_v23  ;;  %v1001_v50 = vld [vmem:[%s1301_s1 + $0x160] sm:$0xff]  ;;  %v31_v51 = vld [vmem:[%s1300_s0 + $0x18] sm:$0xf]  ;;  %v991_v55 = vld [vmem:[%s1301_s1 + $0x110] sm:$0xff] }
  0x1a   :  { %462 = vmatpush.bf16.msra.mxu0 %v958_v24  ;;  %v992_v52 = vld [vmem:[%s1301_s1 + $0x118] sm:$0xff]  ;;  %v144_v54 = vunpack.c.l.b16 %v31_v51  ;;  %v999_v56 = vld [vmem:[%s1301_s1 + $0x150] sm:$0xff]  ;;  %v990_v58 = vld [vmem:[%s1301_s1 + $0x108] sm:$0xff] }
  0x1b   :  { %475 = vmatpush.bf16.msra.mxu1 %v966_v25  ;;  %v1000_v53 = vld [vmem:[%s1301_s1 + $0x158] sm:$0xff]  ;;  %v998_v59 = vld [vmem:[%s1301_s1 + $0x148] sm:$0xff]  ;;  %v30_v60 = vld [vmem:[%s1300_s0 + $0x10] sm:$0xff] }
  0x1c   :  { %488 = vmatpush.bf16.msra.mxu2 %v974_v27  ;;  %v151_v57 = vpack.c.b16 %v144_v54, %v144_v54  ;;  %v142_v61 = vunpack.c.l.b16 %v30_v60  ;;  %v143_v62 = vunpack.c.h.b16 %v30_v60  ;;  %v989_v63 = vld [vmem:[%s1301_s1 + $0x100] sm:$0xff]  ;;  %v1013_v3 = vld [vmem:[%s1303_s3 + $0x38] sm:$0xff]  ;;  %v1012_v4 = vld [vmem:[%s1303_s3 + $0x30] sm:$0xff] }
  0x1d   :  { %501 = vmatpush.bf16.msra.mxu3 %v982_v30  ;;  %v997_v0 = vld [vmem:[%s1301_s1 + $0x140] sm:$0xff]  ;;  %v1011_v5 = vld [vmem:[%s1303_s3 + $0x28] sm:$0xff]  ;;  %v1009_v7 = vld [vmem:[%s1303_s3 + $0x18] sm:$0xff] }
  0x1e   :  { %463 = vmatpush.bf16.msra.mxu0 %v957_v32  ;;  %v149_v1 = vpack.c.b16 %v142_v61, %v142_v61  ;;  %v150_v2 = vpack.c.b16 %v143_v62, %v143_v62  ;;  %v1010_v6 = vld [vmem:[%s1303_s3 + $0x20] sm:$0xff]  ;;  %v1008_v8 = vld [vmem:[%s1303_s3 + $0x10] sm:$0xff]  ;;  %v1007_v9 = vld [vmem:[%s1303_s3 + $0x8] sm:$0xff] }
  0x1f   :  { %476 = vmatpush.bf16.msra.mxu1 %v965_v33  ;;  %v1006_v12 = vld [vmem:[%s1303_s3] sm:$0xff]  ;;  %v1017_v15 = vld [vmem:[%s1305_s5 + $0x18] sm:$0xff]  ;;  %v1016_v18 = vld [vmem:[%s1305_s5 + $0x10] sm:$0xff] }
  0x20   :  { %489 = vmatpush.bf16.msra.mxu2 %v973_v36  ;;  %v1019_v19 = vld [vmem:[%s1302_s2] ss:$0 sm:$0xff]  ;;  %v1015_v20 = vld [vmem:[%s1305_s5 + $0x8] sm:$0xff] }
  0x21   :  { %464 = vmatmul.bf16.vlgmr.msra.gmra.mxu0 %v145_v38  ;;  %502 = vmatpush.bf16.msra.mxu3 %v981_v41  ;;  %v1014_v38 = vld [vmem:[%s1305_s5] sm:$0xff] }
  0x22   :  { %508 = vmatpush.bf16.msrb.mxu0 %v996_v34  ;;  %477 = vmatmul.bf16.vlgmr.msra.gmra.mxu1 %v146_v39  ;;  %v1020_v39 = vld [vmem:[%s1304_s4] ss:$0 sm:$0xff]  ;;  %s1052_s4 = smov [#allocation2]  }
  0x23   :  { %521 = vmatpush.bf16.msrb.mxu1 %v1004_v35  ;;  %490 = vmatmul.bf16.vlgmr.msra.gmra.mxu2 %v147_v45  ;;  %v1021_v45 = vld [vmem:[%s1306_s6] ss:$0 sm:$0xff]  ;;  %s700_s5 = sshll.u32 %s1052_s4, 4  ;;  %s701_s5 = int_to_ptr.vmem [resolvable:$true] %s700_s5 }
  0x24   :  { %541 = vmatpush.bf16.msrb.mxu2 %v1005_v42  ;;  %503 = vmatmul.bf16.vlgmr.msra.gmra.mxu3 %v148_v46 }
  0x25   :  { %617 = vmatpush.bf16.msrb.mxu3 %v1013_v3 }
  0x26   :  { %509 = vmatpush.bf16.msrb.mxu0 %v995_v43 }
  0x27   :  { %522 = vmatpush.bf16.msrb.mxu1 %v1003_v44 }
  0x28   :  { %676 = vmatpush.bf16.msra.mxu2 %v1017_v15 }
  0x29   :  { %618 = vmatpush.bf16.msrb.mxu3 %v1012_v4 }
  0x2a   :  { %510 = vmatpush.bf16.msrb.mxu0 %v994_v47 }
  0x2b   :  { %523 = vmatpush.bf16.msrb.mxu1 %v1002_v48 }
  0x2c   :  { %677 = vmatpush.bf16.msra.mxu2 %v1016_v18 }
  0x2d   :  { %619 = vmatpush.bf16.msrb.mxu3 %v1011_v5 }
  0x2e   :  { %511 = vmatpush.bf16.msrb.mxu0 %v993_v49 }
  0x2f   :  { %524 = vmatpush.bf16.msrb.mxu1 %v1001_v50 }
  0x30   :  { %678 = vmatpush.bf16.msra.mxu2 %v1015_v20 }
  0x31   :  { %620 = vmatpush.bf16.msrb.mxu3 %v1010_v6 }
  0x32   :  { %512 = vmatpush.bf16.msrb.mxu0 %v992_v52 }
  0x33   :  { %525 = vmatpush.bf16.msrb.mxu1 %v1000_v53  ;;  %907 = vmatmul.msk.bf16.vlgmr.msrb.gmra.mxu2 %vm452_vm0, %v151_v57 }
  0x34   :  { %679 = vmatpush.bf16.msra.mxu2 %v1014_v38 }
  0x35   :  { %621 = vmatpush.bf16.msrb.mxu3 %v1009_v7 }
  0x36   :  { %513 = vmatpush.bf16.msrb.mxu0 %v991_v55 }
  0x37   :  { %526 = vmatpush.bf16.msrb.mxu1 %v999_v56 }
  0x39   :  { %622 = vmatpush.bf16.msrb.mxu3 %v1008_v8 }
  0x3a   :  { %514 = vmatpush.bf16.msrb.mxu0 %v990_v58 }
  0x3b   :  { %527 = vmatpush.bf16.msrb.mxu1 %v998_v59 }
  0x3d   :  { %623 = vmatpush.bf16.msrb.mxu3 %v1007_v9 }
  0x3e   :  { %515 = vmatpush.bf16.msrb.mxu0 %v989_v63 }
  0x3f   :  { %528 = vmatpush.bf16.msrb.mxu1 %v997_v0 }
  0x41   :  { %516 = vmatmul.bf16.vlgmr.msrb.gmra.mxu0 %v149_v1  ;;  %624 = vmatpush.bf16.msrb.mxu3 %v1006_v12 }
  0x42   :  { %529 = vmatmul.bf16.vlgmr.msrb.gmra.mxu1 %v150_v2 }
  0x9e   :  { %v465_v10 = vpop.f32.mrf.mxu0 }
  0x9f   :  { %v478_v11 = vpop.f32.mrf.mxu1  ;;  %v466_v21 = vadd.f32 %v1019_v19, %v465_v10 }
  0xa1   :  { %v479_v24 = vadd.f32 %v478_v11, %v466_v21 }
  0xa6   :  { %v467_v13 = vpop.f32.mrf.mxu0  ;;  %v491_v16 = vpop.f32.mrf.mxu2 }
  0xa7   :  { %v480_v14 = vpop.f32.mrf.mxu1  ;;  %v504_v17 = vpop.f32.mrf.mxu3  ;;  %v492_v25 = vadd.f32 %v491_v16, %v479_v24 }
  0xa9   :  { %v505_v27 = vadd.f32 %v504_v17, %v492_v25 }
  0xae   :  { %v493_v22 = vpop.f32.mrf.mxu2 }
  0xaf   :  { %v506_v23 = vpop.f32.mrf.mxu3 }
  0xb6   :  { %v543_v26 = vpop.f32.mrf.mxu2 }
  0xbe   :  { %v517_v28 = vpop.f32.mrf.mxu0  ;;  %v545_v32 = vpop.f32.mrf.mxu2 }
  0xbf   :  { %v530_v29 = vpop.f32.mrf.mxu1  ;;  %v518_v30 = vadd.f32 %v517_v28, %v505_v27 }
  0xc1   :  { %v531_v31 = vadd.f32 %v530_v29, %v518_v30 }
  0xc3   :  { %v544_v33 = vadd.f32 %v543_v26, %v531_v31 }
  0xc5   :  { %v547_v34 = vmax.f32 %v544_v33, 0.0 }
  0xc6   :  { %v519_v35 = vpop.f32.mrf.mxu0 }
  0xc7   :  { %v532_v36 = vpop.f32.mrf.mxu1  ;;  %v548_v37 = vpack.c.bf16 %v547_v34, %v547_v34 }
  0xc9   :  { %625 = vmatmul.bf16.vlgmr.msrb.gmra.mxu3 %v548_v37 }
 0x14c   :  { %v626_v40 = vpop.f32.mrf.mxu3 }
 0x14d   :  { %v627_v41 = vadd.f32 %v1020_v39, %v626_v40 }
 0x14f   :  { %v630_v42 = vmax.f32 %v627_v41, 0.0 }
 0x151   :  { %v631_v43 = vpack.c.bf16 %v630_v42, %v630_v42 }
 0x153   :  { %956 = vmatmul.msk.bf16.vlgmr.msra.gmra.mxu2 %vm668_vm1, %v631_v43 }
 0x154   :  { %v628_v44 = vpop.f32.mrf.mxu3 }
 0x1d6   :  { %v681_v46 = vpop.f32.mrf.mxu2 }
 0x1d7   :  { %v682_v47 = vadd.f32 %v1021_v45, %v681_v46 }
 0x1d9   :  { %685 = vmax.xlane.f32.xlu0 %v682_v47 }
 0x1de   :  { %v683_v48 = vpop.f32.mrf.mxu2 }
 0x24c   :  { %v686_v49 = vpop.xlane.xlu0 %685 }
 0x24d   :  { %v687_v50 = vsub.f32 %v682_v47, %v686_v49 }
 0x24f   :  { %v688_v51 = vmul.f32 1.442695, %v687_v50 }
 0x251   :  { %1022 = vpow2.f32 %v688_v51 }
 0x257   :  { %v1023_v52 = vpop.eup %1022 }
 0x258   :  { %690 = vadd.xlane.f32.xlu0 %v1023_v52 }
 0x2cb   :  { %v691_v53 = vpop.xlane.xlu0 %690 }
 0x2cc   :  { %1024 = vrcp.f32 %v691_v53 }
 0x2d2   :  { %v1025_v54 = vpop.eup %1024 }
 0x2d3   :  { %v693_v55 = vmul.f32 %v1025_v54, %v1023_v52 }
 0x2d5   :  { %694 = vst [vmem:[#allocation2] sm:$0xff] %v693_v55 }
 0x2d6   :  { %705 = dma.vmem_to_hbm [thread:$0]  %s701_s5, 128, %s703_s19, [#allocation3]  }
 0x2d7   :  { %1050 = dma.done.wait [#allocation3], 128  }
 0x2d8   :  { %1051 = vsyncadd [#allocation3], 4294967168 }
 0x2d9   :  { %710 = vsyncpa [#allocation3], 1 }

</bundles_post_ra>
